<compile_context>
chip_gen: v6e
topology: v6e:2x2x1
jax: 0.10.0
libtpu: 0.0.40
codegen_flags: <defaults>
</compile_context>

<pallas_src>
from functools import partial

import jax
import jax.numpy as jnp
from jax import lax
from jax.experimental import pallas as pl
from jax.experimental.pallas import tpu as pltpu


def _round_up(x, m):
    return (x + m - 1) // m * m


def _pick_row_tile(n_rows, per_row_bytes, n_batch, budget_bytes):
    """Largest divisor of n_rows whose per-tile VMEM footprint fits the budget."""
    best = 1
    for t in range(1, n_rows + 1):
        if n_rows % t == 0 and t * per_row_bytes <= budget_bytes:
            best = t
    if n_batch == 1 and best == n_rows and n_rows >= 2:
        # Single image: keep both v7x TensorCores busy (grid axes are "parallel").
        for t in range(n_rows // 2, 0, -1):
            if n_rows % t == 0:
                best = t
                break
    return best


# ---------------------------------------------------------------------------
# pltpu.roll convention probe (one-time, cached)
# ---------------------------------------------------------------------------
_ROLL_MODE = None


def _roll_mode():
    """Probe pltpu.roll's rotation convention once; fall back to concat shift."""
    global _ROLL_MODE
    if _ROLL_MODE is None:
        def probe_kernel(x_ref, o_ref):
            o_ref[...] = pltpu.roll(x_ref[...], 1, 0)
        try:
            xp = jnp.broadcast_to(
                jnp.arange(16, dtype=jnp.float32)[:, None], (16, 8))
            r = pl.pallas_call(
                probe_kernel,
                out_shape=jax.ShapeDtypeStruct((16, 8), jnp.float32),
            )(xp)
            v = float(r[1, 0])
            if v == 0.0:
                _ROLL_MODE = "np"      # roll(x, s)[i] == x[i - s]  (np.roll)
            elif v == 2.0:
                _ROLL_MODE = "rev"     # roll(x, s)[i] == x[i + s]
            else:
                _ROLL_MODE = "concat"
        except Exception:              # roll not lowerable here -> safe fallback
            _ROLL_MODE = "concat"
    return _ROLL_MODE


def _shift_rows_up(v, mode):
    """Return s with s[i] = v[i+1]; the wrap row is masked/dropped by callers."""
    m = v.shape[0]
    if mode == "np":
        return pltpu.roll(v, m - 1, axis=0)
    if mode == "rev":
        return pltpu.roll(v, 1, axis=0)
    return jnp.concatenate([v[1:], v[:1]], axis=0)


# ---------------------------------------------------------------------------
# Conv (with_conv=True) kernel
# ---------------------------------------------------------------------------
def _downsample_conv_kernel(xm_ref, xh_ref, w0_ref, w1_ref, b_ref, o_ref, *,
                            roll_mode):
    """Stride-2 3x3 conv (after (0,1,0,1) zero pad) on one (batch, row-tile).

    xm_ref : (1, TH, 2, Wh, 2*Cin)  main row pairs; lanes = [even col C | odd col C]
    xh_ref : (1, 1, 1, Wh, 2*Cin)   halo row pair (pair index TH of the tile), phase 0
    w0_ref : (3, 2*Cin, Cout)       kw=0 / kw=1 taps fused along K
    w1_ref : (3, K2, Cout)          kw=2 tap; K2 = 2*Cin (zero padded) or Cin
    b_ref  : (1, Cout)              bias (fp32)
    o_ref  : (1, TH, Wo, Cout)
    """
    th = xm_ref.shape[1]
    wh = xm_ref.shape[3]
    c2 = xm_ref.shape[4]
    wo = o_ref.shape[2]
    cout = o_ref.shape[3]
    k2 = w1_ref.shape[1]
    m = th * wh
    tight = wh == wo            # static: no padded columns -> mask the wrap row

    # Phase slabs flattened to (rows, 2*Cin); Wh % 8 == 0 so the merge is
    # layout preserving.
    f0 = xm_ref[0, :, 0, :, :].reshape(m, c2)   # padded rows 2p   (kh = 0)
    f1 = xm_ref[0, :, 1, :, :].reshape(m, c2)   # padded rows 2p+1 (kh = 1)
    fh = xh_ref[0, 0, 0, :, :]                  # halo pair, phase 0
    if th > 1:                                  # rows 2p+2 (kh = 2); both offsets
        f2 = jnp.concatenate([f0[wh:], fh], axis=0)   # are multiples of 8
    else:
        f2 = fh

    # kw=0 / kw=1 taps: one K=2*Cin matmul per kh, bias folded in.
    acc = (jnp.dot(f0, w0_ref[0], preferred_element_type=jnp.float32)
           + jnp.dot(f1, w0_ref[1], preferred_element_type=jnp.float32)
           + jnp.dot(f2, w0_ref[2], preferred_element_type=jnp.float32)
           + b_ref[...])

    # kw=2 tap: matmul with the *unshifted* slabs, then shift the fp32 partial
    # sum up by one row (= column pair j+1); the shift commutes with the dot.
    if k2 == c2:
        g0, g1, g2 = f0, f1, f2                 # zero-padded weight eats odd lanes
    else:
        g0, g1, g2 = f0[:, :k2], f1[:, :k2], f2[:, :k2]
    t = (jnp.dot(g0, w1_ref[0], preferred_element_type=jnp.float32)
         + jnp.dot(g1, w1_ref[1], preferred_element_type=jnp.float32)
         + jnp.dot(g2, w1_ref[2], preferred_element_type=jnp.float32))
    t = _shift_rows_up(t, roll_mode)            # row i <- row i+1

    if tight:
        # The shifted row landing in the last valid output column really reads
        # the zero pad column (W even): zero it explicitly.
        j = lax.broadcasted_iota(jnp.int32, (m, 1), 0) % wh
        t = jnp.where(j != wh - 1, t, 0.0)

    out = (acc + t).reshape(th, wh, cout)
    if not tight:
        out = out[:, :wo, :]                    # drop padded output columns
    o_ref[0] = out.astype(o_ref.dtype)


def _downsample_conv_nhwc(x, weight_oihw, bias):
    n, h, w, c = x.shape
    assert h >= 2 and w >= 2, "spatial dims must be >= 2"
    cout, cin, kh_, kw_ = weight_oihw.shape
    assert (kh_, kw_) == (3, 3) and cin == c

    ho = (h - 2) // 2 + 1            # == floor((H+1-3)/2)+1 (pad (0,1,0,1), k3 s2)
    wo = (w - 2) // 2 + 1
    hh = ho + 1                      # row pairs incl. one halo pair
    tight = (w % 2 == 0) and (wo % 8 == 0)
    whp = wo if tight else _round_up(wo + 1, 8)
    hp, wp = 2 * hh, 2 * whp

    # Zero padding contains PyTorch's (0,1,0,1) pad; any extra rows/cols are
    # never read by a valid output position.
    xpad = jnp.pad(x, ((0, 0), (0, hp - h), (0, wp - w), (0, 0)))
    # Free, transpose-less reshape:
    #   xr[n, p, a, j, :] = concat(xpad[n, 2p+a, 2j, :], xpad[n, 2p+a, 2j+1, :])
    xr = xpad.reshape(n, hh, 2, whp, 2 * c)

    # Weights: HWIO with kw=0/1 fused along K (matches the folded 2*C lanes).
    w_hwio = jnp.transpose(weight_oihw, (2, 3, 1, 0)).astype(x.dtype)  # (3,3,Ci,Co)
    w0 = jnp.concatenate([w_hwio[:, 0], w_hwio[:, 1]], axis=1)         # (3,2Ci,Co)
    if c % 128 == 0 and c >= 256:
        w1 = w_hwio[:, 2]                                              # (3,Ci,Co)
    else:
        # Widen K to 2*Cin (zeros in the odd-lane half): better MXU K-utilisation
        # on v6e/v7x (256-deep) and no sub-lane slicing for small C.
        w1 = jnp.concatenate([w_hwio[:, 2], jnp.zeros_like(w_hwio[:, 2])], axis=1)
    k2 = w1.shape[1]
    b2 = bias.astype(jnp.float32).reshape(1, cout)

    itemsize = x.dtype.itemsize
    # Per-row-pair VMEM footprint: double-buffered in/out blocks + in-kernel slabs.
    per_pair = (2 * (2 * whp * 2 * c) * itemsize      # main input block (2 bufs)
                + 8 * whp * 2 * c * itemsize          # f/r slabs
                + 3 * whp * cout * 4                  # fp32 partial sums
                + 2 * wo * cout * itemsize)           # output block (2 bufs)
    th = _pick_row_tile(ho, per_pair, n, budget_bytes=24 << 20)
    n_tiles = ho // th

    wbytes = int((w0.size + w1.size) * itemsize + cout * 4)
    halo_bytes = whp * 2 * c * itemsize
    vmem_limit = int(min(64 << 20,
                         max(16 << 20,
                             th * per_pair + 2 * halo_bytes + 2 * wbytes + (4 << 20))))

    cost = pl.CostEstimate(
        flops=2 * 9 * n * ho * wo * c * cout,
        transcendentals=0,
        bytes_accessed=int(xr.size * itemsize + (w0.size + w1.size) * itemsize
                           + n * ho * wo * cout * itemsize),
    )

    kernel = partial(_downsample_conv_kernel, roll_mode=_roll_mode())

    return pl.pallas_call(
        kernel,
        out_shape=jax.ShapeDtypeStruct((n, ho, wo, cout), x.dtype),
        grid=(n, n_tiles),
        in_specs=[
            pl.BlockSpec((1, th, 2, whp, 2 * c), lambda b, i: (b, i, 0, 0, 0)),
            # Halo: one extra row pair just past this tile's last output row,
            # phase 0 only.
            pl.BlockSpec((1, 1, 1, whp, 2 * c),
                         lambda b, i: (b, i * th + th, 0, 0, 0)),
            pl.BlockSpec((3, 2 * c, cout), lambda b, i: (0, 0, 0)),
            pl.BlockSpec((3, k2, cout), lambda b, i: (0, 0, 0)),
            pl.BlockSpec((1, cout), lambda b, i: (0, 0)),
        ],
        out_specs=pl.BlockSpec((1, th, wo, cout), lambda b, i: (b, i, 0, 0)),
        compiler_params=pltpu.CompilerParams(
            dimension_semantics=("parallel", "parallel"),
            vmem_limit_bytes=vmem_limit,
            allow_input_fusion=[True, True, False, False, False],
        ),
        cost_estimate=cost,
    )(xr, xr, w0, w1, b2)


# ---------------------------------------------------------------------------
# Average-pool (with_conv=False) kernel
# ---------------------------------------------------------------------------
def _downsample_pool_kernel(x_ref, o_ref):
    """2x2 average pool, stride 2, on one (batch, row-tile) block.

    x_ref : (1, TP, 2, Wo, 2*C)   lanes = [even-col C | odd-col C]
    o_ref : (1, TP, Wo, C)
    """
    c = o_ref.shape[3]
    s = (x_ref[0, :, 0, :, :].astype(jnp.float32)
         + x_ref[0, :, 1, :, :].astype(jnp.float32))      # (TP, Wo, 2C)
    avg = (s[:, :, :c] + s[:, :, c:]) * 0.25
    o_ref[0] = avg.astype(o_ref.dtype)


def _downsample_pool_nhwc(x):
    n, h, w, c = x.shape
    ho, wo = h // 2, w // 2
    assert ho >= 1 and wo >= 1
    x = x[:, :2 * ho, :2 * wo, :]            # floor crop (matches avg_pool2d)
    xr = x.reshape(n, ho, 2, wo, 2 * c)      # free: no transpose
    itemsize = x.dtype.itemsize

    per_row = (2 * (2 * wo * 2 * c) * itemsize   # input block (2 bufs)
               + 3 * wo * 2 * c * 4              # fp32 temporaries
               + 2 * wo * c * itemsize)          # output block (2 bufs)
    tp = _pick_row_tile(ho, per_row, n, budget_bytes=24 << 20)
    n_tiles = ho // tp
    vmem_limit = int(min(64 << 20, max(16 << 20, tp * per_row + (4 << 20))))

    cost = pl.CostEstimate(
        flops=4 * n * ho * wo * c,
        transcendentals=0,
        bytes_accessed=int((xr.size + n * ho * wo * c) * itemsize),
    )
    return pl.pallas_call(
        _downsample_pool_kernel,
        out_shape=jax.ShapeDtypeStruct((n, ho, wo, c), x.dtype),
        grid=(n, n_tiles),
        in_specs=[pl.BlockSpec((1, tp, 2, wo, 2 * c),
                               lambda b, i: (b, i, 0, 0, 0))],
        out_specs=pl.BlockSpec((1, tp, wo, c), lambda b, i: (b, i, 0, 0)),
        compiler_params=pltpu.CompilerParams(
            dimension_semantics=("parallel", "parallel"),
            vmem_limit_bytes=vmem_limit,
            allow_input_fusion=[True],
        ),
        cost_estimate=cost,
    )(xr)


# ---------------------------------------------------------------------------
# Public wrappers
# ---------------------------------------------------------------------------
def downsample_nhwc(x, weight_oihw=None, bias=None, *, with_conv=True):
    """NHWC Downsample - the transpose-free, efficient entry point."""
    if with_conv:
        assert weight_oihw is not None and bias is not None
        return _downsample_conv_nhwc(x, weight_oihw, bias)
    return _downsample_pool_nhwc(x)


def downsample(x_nchw, weight_oihw=None, bias=None, *, with_conv=True):
    """PyTorch-layout (NCHW) wrapper around `downsample_nhwc`.

    The two transposes below exist only for NCHW parity; in an NHWC pipeline
    call `downsample_nhwc` directly and they disappear.
    """
    x = jnp.transpose(x_nchw, (0, 2, 3, 1))
    out = downsample_nhwc(x, weight_oihw, bias, with_conv=with_conv)
    return jnp.transpose(out, (0, 3, 1, 2))


# ---------------------------------------------------------------------------
# Demo / correctness check
# ---------------------------------------------------------------------------
if __name__ == "__main__":
    key = jax.random.PRNGKey(0)
    kx, kw, kb = jax.random.split(key, 3)

    N, C, H, W = 2, 4, 16, 16
    x = jax.random.normal(kx, (N, C, H, W), jnp.float32)

    fan_in = C * 3 * 3
    weight = jax.random.normal(kw, (C, C, 3, 3), jnp.float32) / jnp.sqrt(fan_in)
    bias = jax.random.normal(kb, (C,), jnp.float32) * 0.01

    def ref_conv(xx):
        xp = jnp.pad(xx, ((0, 0), (0, 0), (0, 1), (0, 1)))
        return lax.conv_general_dilated(
            xp, weight, window_strides=(2, 2), padding="VALID",
            dimension_numbers=("NCHW", "OIHW", "NCHW"),
        ) + bias[None, :, None, None]

    # ---- with_conv=True, even spatial dims (tight-width path) ----
    out_conv = jax.block_until_ready(downsample(x, weight, bias, with_conv=True))
    ref = ref_conv(x)
    assert out_conv.shape == (N, C, H // 2, W // 2), out_conv.shape
    err = float(jnp.max(jnp.abs(out_conv - ref)))
    assert jnp.allclose(out_conv, ref, rtol=1e-4, atol=1e-4), err

    # ---- with_conv=True, odd spatial dims (padded-width path) ----
    x_odd = x[:, :, :15, :15]
    out_odd = jax.block_until_ready(downsample(x_odd, weight, bias, with_conv=True))
    ref_odd = ref_conv(x_odd)
    assert out_odd.shape == ref_odd.shape, out_odd.shape
    err_odd = float(jnp.max(jnp.abs(out_odd - ref_odd)))
    assert jnp.allclose(out_odd, ref_odd, rtol=1e-4, atol=1e-4), err_odd

    # ---- with_conv=False (avg_pool2d k=2 s=2) ----
    out_pool = jax.block_until_ready(downsample(x, with_conv=False))
    ref_pool = x.reshape(N, C, H // 2, 2, W // 2, 2).mean(axis=(3, 5))
    assert out_pool.shape == (N, C, H // 2, W // 2), out_pool.shape
    assert jnp.allclose(out_pool, ref_pool, rtol=1e-5, atol=1e-5)

    # ---- bf16 activations/weights (halves HBM traffic; fp32 accumulation) ----
    out_bf16 = jax.block_until_ready(
        downsample(x.astype(jnp.bfloat16), weight.astype(jnp.bfloat16),
                   bias.astype(jnp.bfloat16), with_conv=True))
    assert out_bf16.dtype == jnp.bfloat16
    assert jnp.allclose(out_bf16.astype(jnp.float32), ref, rtol=1e-1, atol=1e-1)

    print("KERNEL_OK")
</pallas_src>

<mosaic_0001>
module attributes {stable_mosaic.version = 11 : i64} {
  func.func @probe_kernel(%arg0: memref<16x8xf32, #tpu.memory_space<vmem>>, %arg1: memref<16x8xf32, #tpu.memory_space<vmem>>) attributes {dimension_semantics = [], scalar_prefetch = 0 : i64, scratch_operands = 0 : i64, tpu.core_type = #tpu.core_type<tc>} {
    %c0 = arith.constant 0 : index
    %c0_0 = arith.constant 0 : index
    %0 = vector.load %arg0[%c0, %c0_0] : memref<16x8xf32, #tpu.memory_space<vmem>>, vector<16x8xf32>
    %c1_i32 = arith.constant 1 : i32
    %1 = tpu.dynamic_rotate %0 by %c1_i32 dim 0 : vector<16x8xf32>, i32 -> vector<16x8xf32>
    %c0_1 = arith.constant 0 : index
    %c0_2 = arith.constant 0 : index
    %2 = vector.load %arg1[%c0_1, %c0_2] : memref<16x8xf32, #tpu.memory_space<vmem>>, vector<16x8xf32>
    tpu.vector_store %arg1[%c0_1, %c0_2], %1 {strides = array<i32>} : memref<16x8xf32, #tpu.memory_space<vmem>>, vector<16x8xf32>,
    return
  }
}

module attributes {stable_mosaic.version = 11 : i64} {
  func.func @_downsample_conv_kernel(%arg0: i32, %arg1: i32, %arg2: memref<1x8x2x8x8xf32, #tpu.memory_space<vmem>>, %arg3: memref<1x1x1x8x8xf32, #tpu.memory_space<vmem>>, %arg4: memref<3x8x4xf32, #tpu.memory_space<vmem>>, %arg5: memref<3x8x4xf32, #tpu.memory_space<vmem>>, %arg6: memref<1x4xf32, #tpu.memory_space<vmem>>, %arg7: memref<1x8x8x4xf32, #tpu.memory_space<vmem>>) attributes {dimension_semantics = [#tpu.dimension_semantics<parallel>, #tpu.dimension_semantics<parallel>], iteration_bounds = array<i64: 2, 1>, scalar_prefetch = 0 : i64, scratch_operands = 0 : i64, tpu.core_type = #tpu.core_type<tc>, window_params = [{transform_indices = @transform_0, window_bounds = array<i64: 1, 8, 2, 8, 8>}, {transform_indices = @transform_1, window_bounds = array<i64: 1, 1, 1, 8, 8>}, {pipeline_mode = #tpu.pipeline_mode<synchronous>, transform_indices = @transform_2, window_bounds = array<i64: 3, 8, 4>}, {pipeline_mode = #tpu.pipeline_mode<synchronous>, transform_indices = @transform_3, window_bounds = array<i64: 3, 8, 4>}, {pipeline_mode = #tpu.pipeline_mode<synchronous>, transform_indices = @transform_4, window_bounds = array<i64: 1, 4>}, {transform_indices = @transform_5, window_bounds = array<i64: 1, 8, 8, 4>}]} {
    %c0 = arith.constant 0 : index
    %c0_0 = arith.constant 0 : index
    %c0_1 = arith.constant 0 : index
    %c0_2 = arith.constant 0 : index
    %c0_3 = arith.constant 0 : index
    %0 = vector.load %arg2[%c0, %c0_0, %c0_1, %c0_2, %c0_3] : memref<1x8x2x8x8xf32, #tpu.memory_space<vmem>>, vector<1x8x1x8x8xf32>
    %1 = vector.shape_cast %0 : vector<1x8x1x8x8xf32> to vector<8x8x8xf32>
    %2 = vector.shape_cast %1 : vector<8x8x8xf32> to vector<64x8xf32>
    %c0_4 = arith.constant 0 : index
    %c0_5 = arith.constant 0 : index
    %c1 = arith.constant 1 : index
    %c0_6 = arith.constant 0 : index
    %c0_7 = arith.constant 0 : index
    %3 = vector.load %arg2[%c0_4, %c0_5, %c1, %c0_6, %c0_7] : memref<1x8x2x8x8xf32, #tpu.memory_space<vmem>>, vector<1x8x1x8x8xf32>
    %4 = vector.shape_cast %3 : vector<1x8x1x8x8xf32> to vector<8x8x8xf32>
    %5 = vector.shape_cast %4 : vector<8x8x8xf32> to vector<64x8xf32>
    %c0_8 = arith.constant 0 : index
    %c0_9 = arith.constant 0 : index
    %c0_10 = arith.constant 0 : index
    %c0_11 = arith.constant 0 : index
    %c0_12 = arith.constant 0 : index
    %6 = vector.load %arg3[%c0_8, %c0_9, %c0_10, %c0_11, %c0_12] : memref<1x1x1x8x8xf32, #tpu.memory_space<vmem>>, vector<1x1x1x8x8xf32>
    %7 = vector.shape_cast %6 : vector<1x1x1x8x8xf32> to vector<8x8xf32>
    %8 = vector.extract_strided_slice %2 {offsets = [8, 0], sizes = [56, 8], strides = [1, 1]} : vector<64x8xf32> to vector<56x8xf32>
    %9 = tpu.concatenate %8, %7 in 0 : vector<56x8xf32>, vector<8x8xf32> -> vector<64x8xf32>
    %c0_13 = arith.constant 0 : index
    %c0_14 = arith.constant 0 : index
    %c0_15 = arith.constant 0 : index
    %10 = vector.load %arg4[%c0_13, %c0_14, %c0_15] : memref<3x8x4xf32, #tpu.memory_space<vmem>>, vector<1x8x4xf32>
    %11 = vector.shape_cast %10 : vector<1x8x4xf32> to vector<8x4xf32>
    %cst = arith.constant dense<0.000000e+00> : vector<64x4xf32>
    %12 = tpu.matmul %2, %11, %cst {dimension_numbers = #tpu.dot_dimension_numbers<[1], [0], [0], [1], [0, 0, 1, 1], [], []>} : vector<64x8xf32>, vector<8x4xf32>, vector<64x4xf32> -> vector<64x4xf32>
    %c1_16 = arith.constant 1 : index
    %c0_17 = arith.constant 0 : index
    %c0_18 = arith.constant 0 : index
    %13 = vector.load %arg4[%c1_16, %c0_17, %c0_18] : memref<3x8x4xf32, #tpu.memory_space<vmem>>, vector<1x8x4xf32>
    %14 = vector.shape_cast %13 : vector<1x8x4xf32> to vector<8x4xf32>
    %cst_19 = arith.constant dense<0.000000e+00> : vector<64x4xf32>
    %15 = tpu.matmul %5, %14, %cst_19 {dimension_numbers = #tpu.dot_dimension_numbers<[1], [0], [0], [1], [0, 0, 1, 1], [], []>} : vector<64x8xf32>, vector<8x4xf32>, vector<64x4xf32> -> vector<64x4xf32>
    %16 = arith.addf %12, %15 : vector<64x4xf32>
    %c2 = arith.constant 2 : index
    %c0_20 = arith.constant 0 : index
    %c0_21 = arith.constant 0 : index
    %17 = vector.load %arg4[%c2, %c0_20, %c0_21] : memref<3x8x4xf32, #tpu.memory_space<vmem>>, vector<1x8x4xf32>
    %18 = vector.shape_cast %17 : vector<1x8x4xf32> to vector<8x4xf32>
    %cst_22 = arith.constant dense<0.000000e+00> : vector<64x4xf32>
    %19 = tpu.matmul %9, %18, %cst_22 {dimension_numbers = #tpu.dot_dimension_numbers<[1], [0], [0], [1], [0, 0, 1, 1], [], []>} : vector<64x8xf32>, vector<8x4xf32>, vector<64x4xf32> -> vector<64x4xf32>
    %20 = arith.addf %16, %19 : vector<64x4xf32>
    %c0_23 = arith.constant 0 : index
    %c0_24 = arith.constant 0 : index
    %21 = vector.load %arg6[%c0_23, %c0_24] : memref<1x4xf32, #tpu.memory_space<vmem>>, vector<1x4xf32>
    %22 = vector.broadcast %21 : vector<1x4xf32> to vector<64x4xf32>
    %23 = arith.addf %20, %22 : vector<64x4xf32>
    %c0_25 = arith.constant 0 : index
    %c0_26 = arith.constant 0 : index
    %c0_27 = arith.constant 0 : index
    %24 = vector.load %arg5[%c0_25, %c0_26, %c0_27] : memref<3x8x4xf32, #tpu.memory_space<vmem>>, vector<1x8x4xf32>
    %25 = vector.shape_cast %24 : vector<1x8x4xf32> to vector<8x4xf32>
    %cst_28 = arith.constant dense<0.000000e+00> : vector<64x4xf32>
    %26 = tpu.matmul %2, %25, %cst_28 {dimension_numbers = #tpu.dot_dimension_numbers<[1], [0], [0], [1], [0, 0, 1, 1], [], []>} : vector<64x8xf32>, vector<8x4xf32>, vector<64x4xf32> -> vector<64x4xf32>
    %c1_29 = arith.constant 1 : index
    %c0_30 = arith.constant 0 : index
    %c0_31 = arith.constant 0 : index
    %27 = vector.load %arg5[%c1_29, %c0_30, %c0_31] : memref<3x8x4xf32, #tpu.memory_space<vmem>>, vector<1x8x4xf32>
    %28 = vector.shape_cast %27 : vector<1x8x4xf32> to vector<8x4xf32>
    %cst_32 = arith.constant dense<0.000000e+00> : vector<64x4xf32>
    %29 = tpu.matmul %5, %28, %cst_32 {dimension_numbers = #tpu.dot_dimension_numbers<[1], [0], [0], [1], [0, 0, 1, 1], [], []>} : vector<64x8xf32>, vector<8x4xf32>, vector<64x4xf32> -> vector<64x4xf32>
    %30 = arith.addf %26, %29 : vector<64x4xf32>
    %c2_33 = arith.constant 2 : index
    %c0_34 = arith.constant 0 : index
    %c0_35 = arith.constant 0 : index
    %31 = vector.load %arg5[%c2_33, %c0_34, %c0_35] : memref<3x8x4xf32, #tpu.memory_space<vmem>>, vector<1x8x4xf32>
    %32 = vector.shape_cast %31 : vector<1x8x4xf32> to vector<8x4xf32>
    %cst_36 = arith.constant dense<0.000000e+00> : vector<64x4xf32>
    %33 = tpu.matmul %9, %32, %cst_36 {dimension_numbers = #tpu.dot_dimension_numbers<[1], [0], [0], [1], [0, 0, 1, 1], [], []>} : vector<64x8xf32>, vector<8x4xf32>, vector<64x4xf32> -> vector<64x4xf32>
    %34 = arith.addf %30, %33 : vector<64x4xf32>
    %35 = vector.extract_strided_slice %34 {offsets = [1, 0], sizes = [63, 4], strides = [1, 1]} : vector<64x4xf32> to vector<63x4xf32>
    %36 = vector.extract_strided_slice %34 {offsets = [0, 0], sizes = [1, 4], strides = [1, 1]} : vector<64x4xf32> to vector<1x4xf32>
    %37 = tpu.concatenate %35, %36 in 0 : vector<63x4xf32>, vector<1x4xf32> -> vector<64x4xf32>
    %38 = tpu.iota {dimensions = array<i32: 0>} : vector<64x1xi32>
    %c8_i32 = arith.constant 8 : i32
    %c0_i32 = arith.constant 0 : i32
    %39 = arith.cmpi eq, %c8_i32, %c0_i32 : i32
    %c1_i32 = arith.constant 1 : i32
    %40 = arith.select %39, %c1_i32, %c8_i32 : i32
    %41 = vector.broadcast %40 : i32 to vector<64x1xi32>
    %42 = arith.remsi %38, %41 : vector<64x1xi32>
    %c0_i32_37 = arith.constant 0 : i32
    %43 = vector.broadcast %c0_i32_37 : i32 to vector<64x1xi32>
    %44 = arith.cmpi ne, %42, %43 : vector<64x1xi32>
    %c0_i32_38 = arith.constant 0 : i32
    %45 = vector.broadcast %c0_i32_38 : i32 to vector<64x1xi32>
    %46 = arith.cmpi slt, %42, %45 : vector<64x1xi32>
    %c0_i32_39 = arith.constant 0 : i32
    %47 = arith.cmpi slt, %40, %c0_i32_39 : i32
    %48 = vector.broadcast %47 : i1 to vector<64x1xi1>
    %49 = vector.broadcast %48 : vector<64x1xi1> to vector<64x1xi1>
    %50 = arith.xori %46, %49 : vector<64x1xi1>
    %51 = arith.andi %50, %44 : vector<64x1xi1>
    %52 = vector.broadcast %40 : i32 to vector<64x1xi32>
    %53 = arith.addi %42, %52 : vector<64x1xi32>
    %54 = arith.select %51, %53, %42 : vector<64x1xi1>, vector<64x1xi32>
    %c7_i32 = arith.constant 7 : i32
    %55 = vector.broadcast %c7_i32 : i32 to vector<64x1xi32>
    %56 = arith.cmpi ne, %54, %55 : vector<64x1xi32>
    %cst_40 = arith.constant 0.000000e+00 : f32
    %57 = vector.shape_cast %56 : vector<64x1xi1> to vector<64x1xi1>
    %58 = vector.broadcast %57 : vector<64x1xi1> to vector<64x4xi1>
    %59 = vector.broadcast %cst_40 : f32 to vector<64x4xf32>
    %60 = arith.select %58, %37, %59 : vector<64x4xi1>, vector<64x4xf32>
    %61 = arith.addf %23, %60 : vector<64x4xf32>
    %62 = vector.shape_cast %61 : vector<64x4xf32> to vector<8x8x4xf32>
    %c0_41 = arith.constant 0 : index
    %c0_42 = arith.constant 0 : index
    %c0_43 = arith.constant 0 : index
    %c0_44 = arith.constant 0 : index
    %63 = vector.load %arg7[%c0_41, %c0_42, %c0_43, %c0_44] : memref<1x8x8x4xf32, #tpu.memory_space<vmem>>, vector<1x8x8x4xf32>
    %64 = vector.shape_cast %63 : vector<1x8x8x4xf32> to vector<8x8x4xf32>
    %65 = vector.shape_cast %62 : vector<8x8x4xf32> to vector<1x8x8x4xf32>
    tpu.vector_store %arg7[%c0_41, %c0_42, %c0_43, %c0_44], %65 {strides = array<i32>} : memref<1x8x8x4xf32, #tpu.memory_space<vmem>>, vector<1x8x8x4xf32>,
    return
  }
  func.func @transform_0(%arg0: i32, %arg1: i32) -> (i32, i32, i32, i32, i32) {
    %c0_i32 = arith.constant 0 : i32
    %c0_i32_0 = arith.constant 0 : i32
    %c0_i32_1 = arith.constant 0 : i32
    %c0_i32_2 = arith.constant 0 : i32
    return %arg0, %arg1, %c0_i32, %c0_i32_0, %c0_i32_1 : i32, i32, i32, i32, i32
  }
  func.func @transform_1(%arg0: i32, %arg1: i32) -> (i32, i32, i32, i32, i32) {
    %c8_i32 = arith.constant 8 : i32
    %0 = arith.muli %arg1, %c8_i32 : i32
    %c8_i32_0 = arith.constant 8 : i32
    %1 = arith.addi %0, %c8_i32_0 : i32
    %c0_i32 = arith.constant 0 : i32
    %c0_i32_1 = arith.constant 0 : i32
    %c0_i32_2 = arith.constant 0 : i32
    %c0_i32_3 = arith.constant 0 : i32
    return %arg0, %1, %c0_i32, %c0_i32_1, %c0_i32_2 : i32, i32, i32, i32, i32
  }
  func.func @transform_2(%arg0: i32, %arg1: i32) -> (i32, i32, i32) {
    %c0_i32 = arith.constant 0 : i32
    %c0_i32_0 = arith.constant 0 : i32
    %c0_i32_1 = arith.constant 0 : i32
    %c0_i32_2 = arith.constant 0 : i32
    return %c0_i32, %c0_i32_0, %c0_i32_1 : i32, i32, i32
  }
  func.func @transform_3(%arg0: i32, %arg1: i32) -> (i32, i32, i32) {
    %c0_i32 = arith.constant 0 : i32
    %c0_i32_0 = arith.constant 0 : i32
    %c0_i32_1 = arith.constant 0 : i32
    %c0_i32_2 = arith.constant 0 : i32
    return %c0_i32, %c0_i32_0, %c0_i32_1 : i32, i32, i32
  }
  func.func @transform_4(%arg0: i32, %arg1: i32) -> (i32, i32) {
    %c0_i32 = arith.constant 0 : i32
    %c0_i32_0 = arith.constant 0 : i32
    %c0_i32_1 = arith.constant 0 : i32
    return %c0_i32, %c0_i32_0 : i32, i32
  }
  func.func @transform_5(%arg0: i32, %arg1: i32) -> (i32, i32, i32, i32) {
    %c0_i32 = arith.constant 0 : i32
    %c0_i32_0 = arith.constant 0 : i32
    %c0_i32_1 = arith.constant 0 : i32
    return %arg0, %arg1, %c0_i32, %c0_i32_0 : i32, i32, i32, i32
  }
}

</mosaic_0001>

<bundles_post_ra>
// kernel: tpu_custom_call.1
= control target key start
LH: loop header
LB: loop body
LE: loop exit
PB: predicated region body
PF: predicated region fallthrough
CT: control target
= control target key end

     0   :  { %v12_v0 = vlaneseq  ;;  %vm17_vm0 = vcmask 64512   ;;  %s46_s0 = inlined_call_operand.vmem [shape: f32[16,8], index: 0, kind: input, shape index: {}]   ;;  %s47_s1 = inlined_call_operand.vmem [shape: f32[16,8], index: 1, kind: output, shape index: {}]  }
   0x1   :  { %v8_v1 = vld [vmem:[%s46_s0] sm:$0xff]  ;;  %v9_v2 = vld [vmem:[%s46_s0 + $0x8] sm:$0xff] }
   0x2   :  { %v10_v3 = vrot.slane %v8_v1, 7  ;;  %v11_v4 = vrot.slane %v9_v2, 7  ;;  %v13_v5 = vshrl.u32 %v12_v0, 7 }
   0x4   :  { %vm14_vm1 = vcmp.lt.s32.totalorder %v13_v5, 1 }
   0x5   :  { %v16_v6 = vsel %vm14_vm1, %v11_v4, %v10_v3  ;;  %v15_v7 = vsel %vm14_vm1, %v10_v3, %v11_v4 }
   0x6   :  { %18 = vst.msk [vmem:[%s47_s1] sm:$0xff] %vm17_vm0, %v16_v6  ;;  %19 = vst.msk [vmem:[%s47_s1 + $0x8] sm:$0xff] %vm17_vm0, %v15_v7 }

// kernel: tpu_custom_call.1
= control target key start
LH: loop header
LB: loop body
LE: loop exit
PB: predicated region body
PF: predicated region fallthrough
CT: control target
= control target key end

     0   :  { %s1674_s18 = smov 0   ;;  %s1676_s19 = smov 0   ;;  %s1966_s0 = inlined_call_operand.vmem [shape: f32[2,9,2,8,8], index: 0, kind: input, shape index: {}]   ;;  %s1967_s1 = inlined_call_operand.vmem [shape: f32[2,9,2,8,8], index: 1, kind: input, shape index: {}]   ;;  %s1968_s2 = inlined_call_operand.vmem [shape: f32[3,8,4], index: 2, kind: input, shape index: {}]   ;;  %s1969_s3 = inlined_call_operand.vmem [shape: f32[3,8,4], index: 3, kind: input, shape index: {}]   ;;  %s1970_s4 = inlined_call_operand.vmem [shape: f32[1,4], index: 4, kind: input, shape index: {}]   ;;  %s1971_s5 = inlined_call_operand.vmem [shape: f32[2,8,8,4], index: 5, kind: output, shape index: {}]  }
   0x1   :  { %s1678_s20 = smov 0  }
   0x2 LB: > { %s27_s21 = sadd.s32 1, %s1638_s19  ;;  %p1384_p0 = scmp.ge.s32.totalorder %s1642_s20, 1  ;;  %s1642_s20 = sphi %s1678_s20, %s15_s20   ;;  %s1638_s19 = sphi %s1676_s19, %s1987_s19   ;;  %s1634_s18 = sphi %s1674_s18, %s1986_s18  }
   0x3   : > { %p29_p1 = scmp.ge.s32.totalorder %s27_s21, 2  ;;  %p243_p2 = scmp.lt.s32.totalorder %s1642_s20, 3 }
   0x5   : > { %s1989_s21 = smov (%p29_p1, %s27_s21), 0  ;;  %p244_p3 = pnand %p1384_p0, %p243_p2 }
   0x6   : > { %p302_p4 = scmp.lt.s32.totalorder (!%p244_p3), %s1634_s18, 1 }
   0x7   : > { %247 = sbr.rel (%p244_p3) target bundleno = 268 (0x10c), region = 40 }
   0xc   : > { %v1397_v0 = vld [vmem:[%s1968_s2 + $0x8] sm:$0xff]  ;;  %v358_v1 = vld [vmem:[%s1968_s2] sm:$0xff]  ;;  %v1414_v2 = vld [vmem:[%s1968_s2 + $0x10] sm:$0xff]  ;;  %s1991_s18 = smov (!%p302_p4, %s1634_s18), 1  ;;  %vm361_vm0 = vcmask 64512   ;;  %v1115_v47 = vlaneseq  ;;  %vm1089_vm1 = vcmask 1046528  }
   0xd   : > { %1509 = vmatprep.subr.mxu0 %v1397_v0  ;;  %1523 = vmatprep.subr.mxu1 %v358_v1  ;;  %v1424_v3 = vld [vmem:[%s1969_s3 + $0x8] sm:$0xff]  ;;  %s1593_s30 = smul.u32 144, %s1991_s18  ;;  %v753_v10 = vld [vmem:[%s1969_s3] sm:$0xff]  ;;  %v1441_v11 = vld [vmem:[%s1969_s3 + $0x10] sm:$0xff]  ;;  %vm1260_vm3 = vcmask 31744   ;;  %s1454_s23 = sshll.u32 %s1991_s18, 6 }
   0xe   : > { %1510 = vmatpush3.msra.mxu0 %v1397_v0  ;;  %1524 = vmatpush3.msra.mxu1 %v358_v1  ;;  %v1116_v52 = vshrl.u32 %v1115_v47, 7  ;;  %s1888_s25 = scalar_lea.vmem %s1971_s5, %s1454_s23 }
   0xf   : > { %1537 = vmatprep.subr.mxu0 %v1414_v2  ;;  %1551 = vmatprep.subr.mxu1 %v1424_v3  ;;  %s1712_s8 = scalar_lea.vmem %s1966_s0, %s1593_s30  ;;  %s1453_s13 = sadd.s32 128, %s1593_s30 }
  0x10   : > { %v1389_v4 = vld [vmem:[%s1712_s8 + $0x8] sm:$0xff]  ;;  %v340_v5 = vld [vmem:[%s1712_s8] sm:$0xff]  ;;  %v1390_v6 = vld [vmem:[%s1712_s8 + $0x18] sm:$0xff]  ;;  %s327_s16 = scalar_lea.vmem %s1967_s1, %s1453_s13  ;;  %v1117_v55 = vadd.s32 8, %v1116_v52  ;;  %v1118_v56 = vadd.s32 16, %v1116_v52  ;;  %v1128_v59 = vand.u32 7, %v1116_v52 }
  0x11   : > { %1511 = vmatprep.mubr.msk.f32.mxu0 %vm361_vm0, %v1389_v4  ;;  %1525 = vmatprep.mubr.msk.f32.mxu1 %vm361_vm0, %v340_v5  ;;  %v341_v7 = vld [vmem:[%s1712_s8 + $0x10] sm:$0xff]  ;;  %v1391_v8 = vld [vmem:[%s1712_s8 + $0x28] sm:$0xff]  ;;  %v342_v9 = vld [vmem:[%s1712_s8 + $0x20] sm:$0xff]  ;;  %v1119_v60 = vadd.s32 24, %v1116_v52  ;;  %v1120_v61 = vadd.s32 32, %v1116_v52 }
  0x12   : > { %1512 = vmatmul.mubr.msk.f32.vlgmr.msra.gmra.mxu0 %vm361_vm0, %v1390_v6  ;;  %1526 = vmatmul.mubr.msk.f32.vlgmr.msra.gmra.mxu1 %vm361_vm0, %v341_v7  ;;  %v1392_v12 = vld [vmem:[%s1712_s8 + $0x38] sm:$0xff]  ;;  %v343_v13 = vld [vmem:[%s1712_s8 + $0x30] sm:$0xff]  ;;  %v1393_v14 = vld [vmem:[%s1712_s8 + $0x48] sm:$0xff]  ;;  %v1135_v0 = vand.u32 7, %v1117_v55  ;;  %v1142_v1 = vand.u32 7, %v1118_v56  ;;  %vm1835_vm2 = vcmp.ne.s32.totalorder %v1128_v59, 7 }
  0x13   : > { %1538 = vmatpush3.msra.mxu0 %v1414_v2  ;;  %1552 = vmatpush3.msra.mxu1 %v1424_v3  ;;  %v344_v15 = vld [vmem:[%s1712_s8 + $0x40] sm:$0xff]  ;;  %v1394_v16 = vld [vmem:[%s1712_s8 + $0x58] sm:$0xff]  ;;  %v345_v17 = vld [vmem:[%s1712_s8 + $0x50] sm:$0xff]  ;;  %v1123_v3 = vadd.s32 56, %v1116_v52 }
  0x14   : > { %1514 = vmatprep.mubr.msk.f32.mxu0 %vm361_vm0, %v1391_v8  ;;  %1528 = vmatprep.mubr.msk.f32.mxu1 %vm361_vm0, %v342_v9  ;;  %v1395_v18 = vld [vmem:[%s1712_s8 + $0x68] sm:$0xff]  ;;  %v346_v19 = vld [vmem:[%s1712_s8 + $0x60] sm:$0xff]  ;;  %v1396_v20 = vld [vmem:[%s1712_s8 + $0x78] sm:$0xff]  ;;  %vm1841_vm4 = vcmp.ne.s32.totalorder %v1135_v0, 7  ;;  %vm1845_vm5 = vcmp.ne.s32.totalorder %v1142_v1, 7 }
  0x15   : > { %1565 = vmatprep.subr.mxu0 %v753_v10  ;;  %1579 = vmatprep.subr.mxu1 %v1441_v11  ;;  %v347_v21 = vld [vmem:[%s1712_s8 + $0x70] sm:$0xff]  ;;  %v357_v22 = vld [vmem:[%s327_s16] sm:$0xff] }
  0x16   : > { %1515 = vmatmul.mubr.msk.f32.gmra.mxu0 %vm361_vm0, %v1392_v12  ;;  %1529 = vmatmul.mubr.msk.f32.gmra.mxu1 %vm361_vm0, %v343_v13 }
  0x17   : > { %1517 = vmatprep.mubr.msk.f32.mxu0 %vm361_vm0, %v1393_v14  ;;  %1531 = vmatprep.mubr.msk.f32.mxu1 %vm361_vm0, %v344_v15 }
  0x1a   : > { %1518 = vmatmul.mubr.msk.f32.gmra.mxu0 %vm361_vm0, %v1394_v16  ;;  %1532 = vmatmul.mubr.msk.f32.gmra.mxu1 %vm361_vm0, %v345_v17 }
  0x1b   : > { %1520 = vmatprep.mubr.msk.f32.mxu0 %vm361_vm0, %v1395_v18  ;;  %1534 = vmatprep.mubr.msk.f32.mxu1 %vm361_vm0, %v346_v19 }
  0x1e   : > { %1521 = vmatmul.mubr.msk.f32.gmra.mxu0 %vm361_vm0, %v1396_v20  ;;  %1535 = vmatmul.mubr.msk.f32.gmra.mxu1 %vm361_vm0, %v347_v21 }
  0x1f   : > { %1539 = vmatprep.mubr.msk.f32.mxu0 %vm361_vm0, %v341_v7  ;;  %1553 = vmatprep.mubr.msk.f32.mxu1 %vm361_vm0, %v1389_v4  ;;  %v1833_v4 = vadd.s32 40, %v1116_v52 }
  0x22   : > { %1540 = vmatmul.mubr.msk.f32.vlgmr.msra.gmra.mxu0 %vm361_vm0, %v342_v9  ;;  %1554 = vmatmul.mubr.msk.f32.vlgmr.msra.gmra.mxu1 %vm361_vm0, %v1390_v6 }
  0x23   : > { %1566 = vmatpush3.msra.mxu0 %v753_v10  ;;  %1580 = vmatpush3.msra.mxu1 %v1441_v11 }
  0x24   : > { %1542 = vmatprep.mubr.msk.f32.mxu0 %vm361_vm0, %v343_v13  ;;  %1556 = vmatprep.mubr.msk.f32.mxu1 %vm361_vm0, %v1391_v8 }
  0x26   : > { %1543 = vmatmul.mubr.msk.f32.gmra.mxu0 %vm361_vm0, %v344_v15  ;;  %1557 = vmatmul.mubr.msk.f32.gmra.mxu1 %vm361_vm0, %v1392_v12  ;;  %v1149_v12 = vand.u32 7, %v1119_v60 }
  0x27   : > { %1545 = vmatprep.mubr.msk.f32.mxu0 %vm361_vm0, %v345_v17  ;;  %1559 = vmatprep.mubr.msk.f32.mxu1 %vm361_vm0, %v1393_v14 }
  0x28   : > { %vm1863_vm6 = vcmp.ne.s32.totalorder %v1149_v12, 7 }
  0x2a   : > { %1546 = vmatmul.mubr.msk.f32.gmra.mxu0 %vm361_vm0, %v346_v19  ;;  %1560 = vmatmul.mubr.msk.f32.gmra.mxu1 %vm361_vm0, %v1394_v16 }
  0x2b   : > { %1548 = vmatprep.mubr.msk.f32.mxu0 %vm361_vm0, %v347_v21  ;;  %1562 = vmatprep.mubr.msk.f32.mxu1 %vm361_vm0, %v1395_v18 }
  0x2e   : > { %1549 = vmatmul.mubr.msk.f32.gmra.mxu0 %vm361_vm0, %v357_v22  ;;  %1563 = vmatmul.mubr.msk.f32.gmra.mxu1 %vm361_vm0, %v1396_v20 }
  0x2f   : > { %1567 = vmatprep.mubr.msk.f32.mxu0 %vm361_vm0, %v340_v5  ;;  %1581 = vmatprep.mubr.msk.f32.mxu1 %vm361_vm0, %v341_v7 }
  0x32   : > { %1568 = vmatmul.mubr.msk.f32.vlgmr.msra.gmra.mxu0 %vm361_vm0, %v341_v7  ;;  %1582 = vmatmul.mubr.msk.f32.vlgmr.msra.gmra.mxu1 %vm361_vm0, %v342_v9 }
  0x33   : > { %1570 = vmatprep.mubr.msk.f32.mxu0 %vm361_vm0, %v342_v9  ;;  %1584 = vmatprep.mubr.msk.f32.mxu1 %vm361_vm0, %v343_v13  ;;  %v1839_v9 = vadd.s32 48, %v1116_v52  ;;  %v1859_v52 = vld [vmem:[%s1970_s4] ss:$0 sm:$0xff] }
  0x35   : > { %v1170_v47 = vand.u32 7, %v1839_v9 }
  0x36   : > { %1571 = vmatmul.mubr.msk.f32.gmra.mxu0 %vm361_vm0, %v343_v13  ;;  %1585 = vmatmul.mubr.msk.f32.gmra.mxu1 %vm361_vm0, %v344_v15  ;;  %v1156_v13 = vand.u32 7, %v1120_v61 }
  0x37   : > { %1573 = vmatprep.mubr.msk.f32.mxu0 %vm361_vm0, %v344_v15  ;;  %1587 = vmatprep.mubr.msk.f32.mxu1 %vm361_vm0, %v345_v17  ;;  %vm1226_vm10 = vcmp.ne.s32.totalorder %v1170_v47, 7 }
  0x38   : > { %vm1867_vm7 = vcmp.ne.s32.totalorder %v1156_v13, 7 }
  0x3a   : > { %1574 = vmatmul.mubr.msk.f32.gmra.mxu0 %vm361_vm0, %v345_v17  ;;  %1588 = vmatmul.mubr.msk.f32.gmra.mxu1 %vm361_vm0, %v346_v19 }
  0x3b   : > { %1576 = vmatprep.mubr.msk.f32.mxu0 %vm361_vm0, %v346_v19  ;;  %1590 = vmatprep.mubr.msk.f32.mxu1 %vm361_vm0, %v347_v21 }
  0x3e   : > { %1577 = vmatmul.mubr.msk.f32.gmra.mxu0 %vm361_vm0, %v347_v21  ;;  %1591 = vmatmul.mubr.msk.f32.gmra.mxu1 %vm361_vm0, %v357_v22  ;;  %v1177_v21 = vand.u32 7, %v1123_v3  ;;  %v1163_v22 = vand.u32 7, %v1833_v4 }
  0x40   : > { %vm1892_vm8 = vcmp.ne.s32.totalorder %v1177_v21, 7  ;;  %vm1929_vm9 = vcmp.ne.s32.totalorder %v1163_v22, 7 }
  0xd2   : > { %v1789_v23 = vpop.f32.mrf.mxu0  ;;  %v1791_v24 = vpop.f32.mrf.mxu1 }
  0xd4   : > { %v452_v25 = vpop.f32.mrf.mxu0  ;;  %v581_v26 = vpop.f32.mrf.mxu1 }
  0xd5   : > { %v582_v5 = vadd.f32 %v581_v26, %v452_v25  ;;  %v587_v25 = vadd.f32 %v1791_v24, %v1789_v23 }
  0xd6   : > { %v1793_v27 = vpop.f32.mrf.mxu0  ;;  %v1530_v28 = vpop.f32.mrf.mxu1 }
  0xd7   : > { %v597_v26 = vadd.f32 %v1530_v28, %v1793_v27 }
  0xd8   : > { %v462_v29 = vpop.f32.mrf.mxu0  ;;  %v591_v30 = vpop.f32.mrf.mxu1 }
  0xda   : > { %v1795_v31 = vpop.f32.mrf.mxu0  ;;  %v1797_v32 = vpop.f32.mrf.mxu1 }
  0xdb   : > { %v607_v27 = vadd.f32 %v1797_v32, %v1795_v31 }
  0xdc   : > { %v1799_v33 = vpop.f32.mrf.mxu0  ;;  %v1801_v34 = vpop.f32.mrf.mxu1 }
  0xdd   : > { %v602_v31 = vadd.f32 %v1801_v34, %v1799_v33 }
  0xde   : > { %v1803_v35 = vpop.f32.mrf.mxu0  ;;  %v1805_v36 = vpop.f32.mrf.mxu1 }
  0xdf   : > { %v617_v32 = vadd.f32 %v1805_v36, %v1803_v35 }
  0xe0   : > { %v1807_v37 = vpop.f32.mrf.mxu0  ;;  %v1809_v38 = vpop.f32.mrf.mxu1 }
  0xe1   : > { %v612_v36 = vadd.f32 %v1809_v38, %v1807_v37 }
  0xe2   : > { %v1811_v39 = vpop.f32.mrf.mxu0  ;;  %v1555_v40 = vpop.f32.mrf.mxu1 }
  0xe3   : > { %v731_v28 = vadd.f32 %v1811_v39, %v587_v25 }
  0xe4   : > { %v691_v41 = vpop.f32.mrf.mxu0  ;;  %v822_v42 = vpop.f32.mrf.mxu1 }
  0xe5   : > { %v730_v14 = vadd.f32 %v691_v41, %v582_v5  ;;  %v746_v3 = vadd.f32 %v1859_v52, %v731_v28 }
  0xe6   : > { %v1813_v43 = vpop.f32.mrf.mxu0  ;;  %v1558_v44 = vpop.f32.mrf.mxu1 }
  0xe8   : > { %v1815_v45 = vpop.f32.mrf.mxu0  ;;  %v832_v46 = vpop.f32.mrf.mxu1 }
  0xea   : > { %v1817_v48 = vpop.f32.mrf.mxu0  ;;  %v1819_v49 = vpop.f32.mrf.mxu1 }
  0xeb   : > { %v735_v25 = vadd.f32 %v1817_v48, %v607_v27 }
  0xec   : > { %v1821_v50 = vpop.f32.mrf.mxu0  ;;  %v1823_v51 = vpop.f32.mrf.mxu1 }
  0xed   : > { %v750_v23 = vadd.f32 %v1859_v52, %v735_v25 }
  0xee   : > { %v1825_v53 = vpop.f32.mrf.mxu0  ;;  %v1827_v54 = vpop.f32.mrf.mxu1 }
  0xef   : > { %v737_v17 = vadd.f32 %v1825_v53, %v617_v32 }
  0xf0   : > { %v1829_v57 = vpop.f32.mrf.mxu0  ;;  %v1831_v58 = vpop.f32.mrf.mxu1 }
  0xf1   : > { %v736_v18 = vadd.f32 %v1829_v57, %v612_v36  ;;  %v752_v24 = vadd.f32 %v1859_v52, %v737_v17 }
  0xf2   : > { %v1569_v62 = vpop.f32.mrf.mxu0  ;;  %v1583_v63 = vpop.f32.mrf.mxu1 }
  0xf3   : > { %v933_v2 = vadd.f32 %v1569_v62, %v1555_v40  ;;  %v592_v40 = vadd.f32 %v591_v30, %v462_v29  ;;  %v745_v29 = vadd.f32 %v1859_v52, %v730_v14  ;;  %v733_v30 = vadd.f32 %v1813_v43, %v597_v26 }
  0xf4   : > { %v927_v6 = vpop.f32.mrf.mxu0  ;;  %v1034_v7 = vpop.f32.mrf.mxu1  ;;  %v751_v22 = vadd.f32 %v1859_v52, %v736_v18 }
  0xf5   : > { %v1074_v10 = vadd.f32 %v1583_v63, %v933_v2  ;;  %v928_v11 = vadd.f32 %v927_v6, %v822_v42  ;;  %v748_v5 = vadd.f32 %v1859_v52, %v733_v30  ;;  %v734_v6 = vadd.f32 %v1821_v50, %v602_v31 }
  0xf6   : > { %v1572_v15 = vpop.f32.mrf.mxu0  ;;  %v1586_v16 = vpop.f32.mrf.mxu1 }
  0xf7   : > { %v1849_v19 = vadd.f32 %v1034_v7, %v928_v11  ;;  %v943_v20 = vadd.f32 %v1572_v15, %v1558_v44  ;;  %v1091_v55 = vrot.slane %v1074_v10, 1  ;;  %v749_v26 = vadd.f32 %v1859_v52, %v734_v6 }
  0xf8   : > { %v937_v41 = vpop.f32.mrf.mxu0  ;;  %v1044_v42 = vpop.f32.mrf.mxu1 }
  0xf9   : > { %v1090_v44 = vrot.slane %v1849_v19, 1  ;;  %v1076_v56 = vadd.f32 %v1586_v16, %v943_v20  ;;  %v938_v59 = vadd.f32 %v937_v41, %v832_v46  ;;  %v732_v46 = vadd.f32 %v1815_v45, %v592_v40 }
  0xfa   : > { %v1575_v60 = vpop.f32.mrf.mxu0  ;;  %v1589_v61 = vpop.f32.mrf.mxu1 }
  0xfb   : > { %v1092_v62 = vsel %vm1089_vm1, %v1090_v44, %v1091_v55  ;;  %v1075_v63 = vadd.f32 %v1044_v42, %v938_v59  ;;  %v953_v0 = vadd.f32 %v1575_v60, %v1819_v49  ;;  %v1095_v43 = vrot.slane %v1076_v56, 1 }
  0xfc   : > { %v1244_v39 = vsel %vm1835_vm2, %v1092_v62, 0.0  ;;  %v947_v45 = vpop.f32.mrf.mxu0  ;;  %v1054_v1 = vpop.f32.mrf.mxu1  ;;  %v747_v10 = vadd.f32 %v1859_v52, %v732_v46 }
  0xfd   : > { %v1252_v33 = vadd.f32 %v1244_v39, %v745_v29  ;;  %v1093_v34 = vrot.slane %v1075_v63, 1  ;;  %v1078_v2 = vadd.f32 %v1589_v61, %v953_v0  ;;  %v948_v35 = vadd.f32 %v947_v45, %v1823_v51 }
  0xfe   : > { %v1578_v7 = vpop.f32.mrf.mxu0  ;;  %v1592_v8 = vpop.f32.mrf.mxu1 }
  0xff   : > { %1261 = vst.msk [vmem:[%s1888_s25] sm:$0xff] %vm1260_vm3, %v1252_v33  ;;  %v1094_v11 = vsel %vm1089_vm1, %v1091_v55, %v1093_v34  ;;  %v1096_v12 = vsel %vm1089_vm1, %v1093_v34, %v1095_v43  ;;  %v1077_v51 = vadd.f32 %v1054_v1, %v948_v35  ;;  %v1099_v50 = vrot.slane %v1078_v2, 1 }
 0x100   : > { %v1245_v37 = vsel %vm1841_vm4, %v1094_v11, 0.0  ;;  %v1246_v38 = vsel %vm1845_vm5, %v1096_v12, 0.0  ;;  %v963_v13 = vadd.f32 %v1578_v7, %v1827_v54  ;;  %v957_v14 = vpop.f32.mrf.mxu0  ;;  %v1064_v41 = vpop.f32.mrf.mxu1 }
 0x101   : > { %v1253_v15 = vadd.f32 %v1245_v37, %v746_v3  ;;  %v1254_v16 = vadd.f32 %v1246_v38, %v747_v10  ;;  %v1097_v20 = vrot.slane %v1077_v51, 1  ;;  %v958_v21 = vadd.f32 %v957_v14, %v1831_v58 }
 0x102   : > { %v1080_v40 = vadd.f32 %v1592_v8, %v963_v13 }
 0x103   : > { %1262 = vst.msk [vmem:[%s1888_s25 + $0x8] sm:$0xff] %vm1260_vm3, %v1253_v15  ;;  %1263 = vst.msk [vmem:[%s1888_s25 + $0x10] sm:$0xff] %vm1260_vm3, %v1254_v16  ;;  %v1098_v54 = vsel %vm1089_vm1, %v1095_v43, %v1097_v20  ;;  %v1100_v58 = vsel %vm1089_vm1, %v1097_v20, %v1099_v50  ;;  %v1079_v42 = vadd.f32 %v1064_v41, %v958_v21 }
 0x104   : > { %v1247_v48 = vsel %vm1863_vm6, %v1098_v54, 0.0  ;;  %v1248_v53 = vsel %vm1867_vm7, %v1100_v58, 0.0  ;;  %v1103_v55 = vrot.slane %v1080_v40, 1 }
 0x105   : > { %v1255_v56 = vadd.f32 %v1247_v48, %v748_v5  ;;  %v1256_v59 = vadd.f32 %v1248_v53, %v749_v26  ;;  %v1101_v27 = vrot.slane %v1079_v42, 1 }
 0x106   : > { %v1114_v4 = vsel %vm1089_vm1, %v1103_v55, %v1090_v44 }
 0x107   : > { %1264 = vst.msk [vmem:[%s1888_s25 + $0x18] sm:$0xff] %vm1260_vm3, %v1255_v56  ;;  %1265 = vst.msk [vmem:[%s1888_s25 + $0x20] sm:$0xff] %vm1260_vm3, %v1256_v59  ;;  %v1251_v9 = vsel %vm1892_vm8, %v1114_v4, 0.0  ;;  %v1102_v47 = vsel %vm1089_vm1, %v1099_v50, %v1101_v27  ;;  %v1104_v28 = vsel %vm1089_vm1, %v1101_v27, %v1103_v55 }
 0x108   : > { %v1259_v29 = vadd.f32 %v1251_v9, %v752_v24  ;;  %v1249_v30 = vsel %vm1929_vm9, %v1102_v47, 0.0  ;;  %v1250_v19 = vsel %vm1226_vm10, %v1104_v28, 0.0 }
 0x109   : > { %v1257_v60 = vadd.f32 %v1249_v30, %v750_v23  ;;  %v1258_v44 = vadd.f32 %v1250_v19, %v751_v22 }
 0x10a   : > { %1268 = vst.msk [vmem:[%s1888_s25 + $0x38] sm:$0xff] %vm1260_vm3, %v1259_v29 }
 0x10b   : > { %1266 = vst.msk [vmem:[%s1888_s25 + $0x28] sm:$0xff] %vm1260_vm3, %v1257_v60  ;;  %1267 = vst.msk [vmem:[%s1888_s25 + $0x30] sm:$0xff] %vm1260_vm3, %v1258_v44 }
 0x10c PF: > { %s15_s20 = sadd.s32 1, %s1642_s20   ;;  %s1986_s18 = smov %s1638_s19 }
 0x10d   : > { %p12_p5 = scmp.ge.s32.totalorder %s15_s20, 4   ;;  %s1987_s19 = smov %s1989_s21 }
 0x10f   :  { %14 = sbr.rel (!%p12_p5) target bundleno = 2 (0x2), region = 78 }

</bundles_post_ra>
